<compile_context>
chip_gen: v6e
topology: v6e:2x2x1
jax: 0.10.0
libtpu: 0.0.40
codegen_flags: <defaults>
</compile_context>

<pallas_src>
import jax
import jax.numpy as jnp
from jax.experimental import pallas as pl
from jax.experimental.pallas import tpu as pltpu

# ---- tetris constants (standard Tetris board) ----
COLUMNS = 10
ROWS = 20
NUM_TILES = 7
PADDING = 2

COLUMN_OFFSET = PADDING
DROPPABLE_COLUMNS = COLUMNS + COLUMN_OFFSET        # 12
INPUT_LENGTH = 2 * COLUMNS + NUM_TILES             # 27
FUSED_IN = COLUMNS + NUM_TILES                     # 17 (raw depths | one-hot)
OUT_DIM = 4 * DROPPABLE_COLUMNS                    # 48
OUT_PAD = 128                                      # lane-dense padded output width
HIDDEN = 128


def _round_up(x, m):
    return (x + m - 1) // m * m


def _cdiv(a, b):
    return -(-a // b)


def _choose_grid(batch, block_b):
    """Pick (tile_rows, padded_batch, num_steps).

    tile_rows is a multiple of 8; for batch >= 128 the grid length is forced
    even and >= 2 so ("parallel",) shards across v7x's two TensorCores."""
    n = max(1, _cdiv(batch, block_b))
    if batch >= 128:
        n = max(n, 2)
    if n > 1 and n % 2:
        n += 1
    tb = _round_up(_cdiv(batch, n), 8)
    return tb, n * tb, n


# ---------------------------------------------------------------------------
# Kernel
# ---------------------------------------------------------------------------
def depths_net_kernel(x_ref, w1_ref, s1b_ref, b1_ref, w2_ref, b2_ref,
                      w3_ref, b3_ref, out_ref):
    x = x_ref[...]                                   # (TB, 17) f32: depths | one-hot
    cdt = w1_ref.dtype                               # matmul operand dtype

    # rank-1 correction uses the per-row max of the DEPTH lanes only (0:COLUMNS)
    row_max = jnp.max(x[:, :COLUMNS], axis=1, keepdims=True)      # (TB, 1) f32

    # dense1 (single fused matmul over [depths | one_hot]) + ReLU
    h1 = jnp.dot(x.astype(cdt), w1_ref[...],
                 preferred_element_type=jnp.float32)
    h1 = h1 + b1_ref[...] - row_max * s1b_ref[...]
    h1 = jnp.maximum(h1, 0.0)

    # dense2 + ReLU
    h2 = jnp.dot(h1.astype(cdt), w2_ref[...],
                 preferred_element_type=jnp.float32) + b2_ref[...]
    h2 = jnp.maximum(h2, 0.0)

    # dense3 (lane-dense 128-wide store; true width 48 is sliced by the caller)
    out = jnp.dot(h2.astype(cdt), w3_ref[...],
                  preferred_element_type=jnp.float32) + b3_ref[...]
    out_ref[...] = out.astype(out_ref.dtype)


# ---------------------------------------------------------------------------
# One-time weight preprocessing (hoisted out of the per-call path)
# ---------------------------------------------------------------------------
def prepare_params(params, *, compute_dtype=jnp.bfloat16):
    """Fold preprocessing into dense1, pad dense3 lane-dense, cast matmul
    operands to `compute_dtype`.  Call once; reuse across forward calls."""
    w1, b1, w2, b2, w3, b3 = params
    cdt = jnp.dtype(compute_dtype)

    w1a = w1[:COLUMNS]                       # rows hit by normalized depths
    w1b = w1[COLUMNS:2 * COLUMNS]            # rows hit by relative depths
    w1c = w1[2 * COLUMNS:]                   # rows hit by the one-hot tile id
    # stacked (17, 128): raw depths hit (W1a/ROWS + W1b), one-hot hits W1c
    w1f = jnp.concatenate([w1a / float(ROWS) + w1b, w1c], axis=0).astype(cdt)
    s1b = jnp.sum(w1b, axis=0, keepdims=True)                       # (1, H) f32
    b1_adj = b1 - 0.5 * jnp.sum(w1a, axis=0, keepdims=True)          # (1, H) f32

    w3p = jnp.pad(w3, ((0, 0), (0, OUT_PAD - OUT_DIM))).astype(cdt)  # (H, 128)
    b3p = jnp.pad(b3, ((0, 0), (0, OUT_PAD - OUT_DIM)))              # (1, 128) f32

    return (w1f, s1b, b1_adj, w2.astype(cdt), b2, w3p, b3p)


# ---------------------------------------------------------------------------
# Forward wrapper
# ---------------------------------------------------------------------------
def depths_network(depths, tile_id, prepared, *, block_b=2048,
                   out_dtype=None, trim=True):
    """Forward pass. `prepared` comes from prepare_params().

    out_dtype: HBM store dtype of the kernel output (default = compute dtype;
               bf16 halves the dominant HBM write stream).
    trim:      if False, return the raw (padded_batch, 128) slab and skip the
               wrapper-side slice copy (consumer reads [:B, :OUT_DIM])."""
    w1f, s1b, b1_adj, w2c, b2, w3p, b3p = prepared
    cdt = w1f.dtype
    out_dtype = jnp.dtype(out_dtype) if out_dtype is not None else cdt

    B = depths.shape[0]

    # fused (B, 17) input: raw depths in lanes 0:10, one-hot tile in lanes 10:17
    one_hot = jax.nn.one_hot(tile_id.astype(jnp.int32), NUM_TILES,
                             dtype=jnp.float32)
    x = jnp.concatenate([depths.astype(jnp.float32), one_hot], axis=-1)

    tb, b_pad, n_steps = _choose_grid(B, block_b)
    if b_pad != B:
        x = jnp.pad(x, ((0, b_pad - B), (0, 0)))

    batch_spec = lambda shape: pl.BlockSpec(shape, lambda i: (i, 0))
    resident = lambda shape: pl.BlockSpec(shape, lambda i: (0, 0))
    # NOTE: resident specs could use pipeline_mode=pl.Buffered(1) to drop the
    # redundant second weight buffer (~200 KB); left at the default for
    # maximum compatibility across jax versions.

    out = pl.pallas_call(
        depths_net_kernel,
        out_shape=jax.ShapeDtypeStruct((b_pad, OUT_PAD), out_dtype),
        grid_spec=pltpu.PrefetchScalarGridSpec(
            num_scalar_prefetch=0,
            grid=(n_steps,),
            in_specs=[
                batch_spec((tb, FUSED_IN)),           # fused depths | one-hot
                resident((FUSED_IN, HIDDEN)),         # stacked folded W1
                resident((1, HIDDEN)),                # colsum(W1b)
                resident((1, HIDDEN)),                # b1 - 0.5*colsum(W1a)
                resident((HIDDEN, HIDDEN)),           # w2
                resident((1, HIDDEN)),                # b2
                resident((HIDDEN, OUT_PAD)),          # w3 (padded to 128 lanes)
                resident((1, OUT_PAD)),               # b3 (padded)
            ],
            out_specs=batch_spec((tb, OUT_PAD)),
        ),
        compiler_params=pltpu.CompilerParams(
            dimension_semantics=("parallel",),
            vmem_limit_bytes=32 * 1024 * 1024,        # safe on v5e..v7x, fits TB=4096
        ),
    )(x, w1f, s1b, b1_adj, w2c, b2, w3p, b3p)

    if trim:
        return out[:B, :OUT_DIM]
    return out


# ---------------------------------------------------------------------------
# Init + reference
# ---------------------------------------------------------------------------
def init_params(key):
    """Deterministic init mimicking nn.Linear default (uniform ±1/sqrt(fan_in)).
    Weights are stored (in, out) so the kernel computes x @ W directly."""
    ks = jax.random.split(key, 6)

    def linear(kw, kb, fan_in, fan_out):
        bound = 1.0 / float(fan_in) ** 0.5
        w = jax.random.uniform(kw, (fan_in, fan_out), jnp.float32, -bound, bound)
        b = jax.random.uniform(kb, (1, fan_out), jnp.float32, -bound, bound)
        return w, b

    w1, b1 = linear(ks[0], ks[1], INPUT_LENGTH, HIDDEN)
    w2, b2 = linear(ks[2], ks[3], HIDDEN, HIDDEN)
    w3, b3 = linear(ks[4], ks[5], HIDDEN, OUT_DIM)
    return (w1, b1, w2, b2, w3, b3)


def reference_forward(depths, tile_id, params):
    """Pure-JAX reference of the PyTorch forward (f32, HIGHEST matmul precision)."""
    w1, b1, w2, b2, w3, b3 = params
    hp = jax.lax.Precision.HIGHEST
    one_hot = jax.nn.one_hot(tile_id, NUM_TILES, dtype=jnp.float32)
    normalized = depths / float(ROWS) - 0.5
    relative = depths - jnp.max(depths, axis=1, keepdims=True)
    x = jnp.concatenate([normalized, relative, one_hot], axis=-1)
    h = jax.nn.relu(jnp.dot(x, w1, precision=hp) + b1)
    h = jax.nn.relu(jnp.dot(h, w2, precision=hp) + b2)
    return jnp.dot(h, w3, precision=hp) + b3


if __name__ == "__main__":
    key = jax.random.PRNGKey(0)
    k_params, k_depths, k_tile = jax.random.split(key, 3)

    # Non-multiple of the batch tile so padding + the even (>=2) grid are exercised.
    B = 300
    params = init_params(k_params)
    depths = jax.random.randint(k_depths, (B, COLUMNS), 0, ROWS + 1).astype(jnp.float32)
    tile_id = jax.random.randint(k_tile, (B,), 0, NUM_TILES).astype(jnp.int32)

    ref = reference_forward(depths, tile_id, params)

    # f32 operands + f32 store (strictest-numerics path)
    prep_f32 = prepare_params(params, compute_dtype=jnp.float32)
    out_f32 = jax.block_until_ready(
        depths_network(depths, tile_id, prep_f32, out_dtype=jnp.float32))

    # default path: bf16 operands (recommended on v5e/v6e/v7x) + bf16 store
    prep_bf16 = prepare_params(params)                 # compute_dtype=bf16
    out_bf16 = jax.block_until_ready(
        depths_network(depths, tile_id, prep_bf16))

    # padded slab path (no wrapper-side slice copy)
    out_slab = jax.block_until_ready(
        depths_network(depths, tile_id, prep_bf16, trim=False))

    assert out_f32.shape == (B, OUT_DIM)
    assert out_bf16.shape == (B, OUT_DIM)
    assert out_slab.shape[1] == OUT_PAD and out_slab.shape[0] >= B
    assert jnp.allclose(out_f32, ref, atol=5e-2, rtol=5e-2)
    assert jnp.allclose(out_bf16.astype(jnp.float32), ref, atol=2e-1, rtol=5e-2)
    assert jnp.allclose(out_slab[:B, :OUT_DIM].astype(jnp.float32), ref,
                        atol=2e-1, rtol=5e-2)

    print("KERNEL_OK")
</pallas_src>

<mosaic_0001>
module attributes {stable_mosaic.version = 11 : i64} {
  func.func @depths_net_kernel(%arg0: i32, %arg1: memref<152x17xf32, #tpu.memory_space<vmem>>, %arg2: memref<17x128xf32, #tpu.memory_space<vmem>>, %arg3: memref<1x128xf32, #tpu.memory_space<vmem>>, %arg4: memref<1x128xf32, #tpu.memory_space<vmem>>, %arg5: memref<128x128xf32, #tpu.memory_space<vmem>>, %arg6: memref<1x128xf32, #tpu.memory_space<vmem>>, %arg7: memref<128x128xf32, #tpu.memory_space<vmem>>, %arg8: memref<1x128xf32, #tpu.memory_space<vmem>>, %arg9: memref<152x128xf32, #tpu.memory_space<vmem>>) attributes {dimension_semantics = [#tpu.dimension_semantics<parallel>], iteration_bounds = array<i64: 2>, scalar_prefetch = 0 : i64, scratch_operands = 0 : i64, tpu.core_type = #tpu.core_type<tc>, window_params = [{transform_indices = @transform_0, window_bounds = array<i64: 152, 17>}, {pipeline_mode = #tpu.pipeline_mode<synchronous>, transform_indices = @transform_1, window_bounds = array<i64: 17, 128>}, {pipeline_mode = #tpu.pipeline_mode<synchronous>, transform_indices = @transform_2, window_bounds = array<i64: 1, 128>}, {pipeline_mode = #tpu.pipeline_mode<synchronous>, transform_indices = @transform_3, window_bounds = array<i64: 1, 128>}, {pipeline_mode = #tpu.pipeline_mode<synchronous>, transform_indices = @transform_4, window_bounds = array<i64: 128, 128>}, {pipeline_mode = #tpu.pipeline_mode<synchronous>, transform_indices = @transform_5, window_bounds = array<i64: 1, 128>}, {pipeline_mode = #tpu.pipeline_mode<synchronous>, transform_indices = @transform_6, window_bounds = array<i64: 128, 128>}, {pipeline_mode = #tpu.pipeline_mode<synchronous>, transform_indices = @transform_7, window_bounds = array<i64: 1, 128>}, {transform_indices = @transform_8, window_bounds = array<i64: 152, 128>}]} {
    %c0 = arith.constant 0 : index
    %c0_0 = arith.constant 0 : index
    %0 = vector.load %arg1[%c0, %c0_0] : memref<152x17xf32, #tpu.memory_space<vmem>>, vector<152x17xf32>
    %1 = vector.extract_strided_slice %0 {offsets = [0, 0], sizes = [152, 10], strides = [1, 1]} : vector<152x17xf32> to vector<152x10xf32>
    %cst = arith.constant dense<0xFF800000> : vector<152xf32>
    %2 = vector.multi_reduction <maximumf>, %1, %cst [1] : vector<152x10xf32> to vector<152xf32>
    %3 = vector.shape_cast %2 : vector<152xf32> to vector<152x1xf32>
    %c0_1 = arith.constant 0 : index
    %c0_2 = arith.constant 0 : index
    %4 = vector.load %arg2[%c0_1, %c0_2] : memref<17x128xf32, #tpu.memory_space<vmem>>, vector<17x128xf32>
    %cst_3 = arith.constant dense<0.000000e+00> : vector<152x128xf32>
    %5 = tpu.matmul %0, %4, %cst_3 {dimension_numbers = #tpu.dot_dimension_numbers<[1], [0], [0], [1], [0, 0, 1, 1], [], []>} : vector<152x17xf32>, vector<17x128xf32>, vector<152x128xf32> -> vector<152x128xf32>
    %c0_4 = arith.constant 0 : index
    %c0_5 = arith.constant 0 : index
    %6 = vector.load %arg4[%c0_4, %c0_5] : memref<1x128xf32, #tpu.memory_space<vmem>>, vector<1x128xf32>
    %7 = vector.broadcast %6 : vector<1x128xf32> to vector<152x128xf32>
    %8 = arith.addf %5, %7 : vector<152x128xf32>
    %c0_6 = arith.constant 0 : index
    %c0_7 = arith.constant 0 : index
    %9 = vector.load %arg3[%c0_6, %c0_7] : memref<1x128xf32, #tpu.memory_space<vmem>>, vector<1x128xf32>
    %10 = vector.broadcast %3 : vector<152x1xf32> to vector<152x128xf32>
    %11 = vector.broadcast %9 : vector<1x128xf32> to vector<152x128xf32>
    %12 = arith.mulf %10, %11 : vector<152x128xf32>
    %13 = arith.subf %8, %12 : vector<152x128xf32>
    %cst_8 = arith.constant 0.000000e+00 : f32
    %14 = vector.broadcast %cst_8 : f32 to vector<152x128xf32>
    %15 = arith.maximumf %13, %14 : vector<152x128xf32>
    %c0_9 = arith.constant 0 : index
    %c0_10 = arith.constant 0 : index
    %16 = vector.load %arg5[%c0_9, %c0_10] : memref<128x128xf32, #tpu.memory_space<vmem>>, vector<128x128xf32>
    %cst_11 = arith.constant dense<0.000000e+00> : vector<152x128xf32>
    %17 = tpu.matmul %15, %16, %cst_11 {dimension_numbers = #tpu.dot_dimension_numbers<[1], [0], [0], [1], [0, 0, 1, 1], [], []>} : vector<152x128xf32>, vector<128x128xf32>, vector<152x128xf32> -> vector<152x128xf32>
    %c0_12 = arith.constant 0 : index
    %c0_13 = arith.constant 0 : index
    %18 = vector.load %arg6[%c0_12, %c0_13] : memref<1x128xf32, #tpu.memory_space<vmem>>, vector<1x128xf32>
    %19 = vector.broadcast %18 : vector<1x128xf32> to vector<152x128xf32>
    %20 = arith.addf %17, %19 : vector<152x128xf32>
    %cst_14 = arith.constant 0.000000e+00 : f32
    %21 = vector.broadcast %cst_14 : f32 to vector<152x128xf32>
    %22 = arith.maximumf %20, %21 : vector<152x128xf32>
    %c0_15 = arith.constant 0 : index
    %c0_16 = arith.constant 0 : index
    %23 = vector.load %arg7[%c0_15, %c0_16] : memref<128x128xf32, #tpu.memory_space<vmem>>, vector<128x128xf32>
    %cst_17 = arith.constant dense<0.000000e+00> : vector<152x128xf32>
    %24 = tpu.matmul %22, %23, %cst_17 {dimension_numbers = #tpu.dot_dimension_numbers<[1], [0], [0], [1], [0, 0, 1, 1], [], []>} : vector<152x128xf32>, vector<128x128xf32>, vector<152x128xf32> -> vector<152x128xf32>
    %c0_18 = arith.constant 0 : index
    %c0_19 = arith.constant 0 : index
    %25 = vector.load %arg8[%c0_18, %c0_19] : memref<1x128xf32, #tpu.memory_space<vmem>>, vector<1x128xf32>
    %26 = vector.broadcast %25 : vector<1x128xf32> to vector<152x128xf32>
    %27 = arith.addf %24, %26 : vector<152x128xf32>
    %c0_20 = arith.constant 0 : index
    %c0_21 = arith.constant 0 : index
    %28 = vector.load %arg9[%c0_20, %c0_21] : memref<152x128xf32, #tpu.memory_space<vmem>>, vector<152x128xf32>
    tpu.vector_store %arg9[%c0_20, %c0_21], %27 {strides = array<i32>} : memref<152x128xf32, #tpu.memory_space<vmem>>, vector<152x128xf32>,
    return
  }
  func.func @transform_0(%arg0: i32) -> (i32, i32) {
    %c0_i32 = arith.constant 0 : i32
    %c0_i32_0 = arith.constant 0 : i32
    return %arg0, %c0_i32 : i32, i32
  }
  func.func @transform_1(%arg0: i32) -> (i32, i32) {
    %c0_i32 = arith.constant 0 : i32
    %c0_i32_0 = arith.constant 0 : i32
    %c0_i32_1 = arith.constant 0 : i32
    return %c0_i32, %c0_i32_0 : i32, i32
  }
  func.func @transform_2(%arg0: i32) -> (i32, i32) {
    %c0_i32 = arith.constant 0 : i32
    %c0_i32_0 = arith.constant 0 : i32
    %c0_i32_1 = arith.constant 0 : i32
    return %c0_i32, %c0_i32_0 : i32, i32
  }
  func.func @transform_3(%arg0: i32) -> (i32, i32) {
    %c0_i32 = arith.constant 0 : i32
    %c0_i32_0 = arith.constant 0 : i32
    %c0_i32_1 = arith.constant 0 : i32
    return %c0_i32, %c0_i32_0 : i32, i32
  }
  func.func @transform_4(%arg0: i32) -> (i32, i32) {
    %c0_i32 = arith.constant 0 : i32
    %c0_i32_0 = arith.constant 0 : i32
    %c0_i32_1 = arith.constant 0 : i32
    return %c0_i32, %c0_i32_0 : i32, i32
  }
  func.func @transform_5(%arg0: i32) -> (i32, i32) {
    %c0_i32 = arith.constant 0 : i32
    %c0_i32_0 = arith.constant 0 : i32
    %c0_i32_1 = arith.constant 0 : i32
    return %c0_i32, %c0_i32_0 : i32, i32
  }
  func.func @transform_6(%arg0: i32) -> (i32, i32) {
    %c0_i32 = arith.constant 0 : i32
    %c0_i32_0 = arith.constant 0 : i32
    %c0_i32_1 = arith.constant 0 : i32
    return %c0_i32, %c0_i32_0 : i32, i32
  }
  func.func @transform_7(%arg0: i32) -> (i32, i32) {
    %c0_i32 = arith.constant 0 : i32
    %c0_i32_0 = arith.constant 0 : i32
    %c0_i32_1 = arith.constant 0 : i32
    return %c0_i32, %c0_i32_0 : i32, i32
  }
  func.func @transform_8(%arg0: i32) -> (i32, i32) {
    %c0_i32 = arith.constant 0 : i32
    %c0_i32_0 = arith.constant 0 : i32
    return %arg0, %c0_i32 : i32, i32
  }
}

</mosaic_0001>

<bundles_post_ra>
// kernel: tpu_custom_call.1
= control target key start
LH: loop header
LB: loop body
LE: loop exit
PB: predicated region body
PF: predicated region fallthrough
CT: control target
= control target key end

     0   :  { %13 = vsyncpa [#allocation3], 0  ;;  %s2291_s0 = inlined_call_operand.vmem [shape: f32[304,17], index: 0, kind: input, shape index: {}]   ;;  %s2292_s1 = inlined_call_operand.vmem [shape: f32[17,128], index: 1, kind: input, shape index: {}]   ;;  %s2293_s2 = inlined_call_operand.vmem [shape: f32[1,128], index: 2, kind: input, shape index: {}]   ;;  %s2294_s3 = inlined_call_operand.vmem [shape: f32[1,128], index: 3, kind: input, shape index: {}]   ;;  %s2295_s4 = inlined_call_operand.vmem [shape: f32[128,128], index: 4, kind: input, shape index: {}]   ;;  %s2296_s5 = inlined_call_operand.vmem [shape: f32[1,128], index: 5, kind: input, shape index: {}]   ;;  %s2297_s6 = inlined_call_operand.vmem [shape: f32[128,128], index: 6, kind: input, shape index: {}]   ;;  %s2298_s7 = inlined_call_operand.vmem [shape: f32[1,128], index: 7, kind: input, shape index: {}]   ;;  %s2299_s8 = inlined_call_operand.hbm [shape: f32[304,128], index: 8, kind: output, shape index: {}]  }
   0x1   :  { %15 = vsyncpa [#allocation3 + $0x1], 0  ;;  %s1688_s27 = smov 0   ;;  %s1690_s28 = smov 0  }
   0x2   :  { %s1692_s29 = smov 0   ;;  %s1694_s30 = smov 0  }
   0x3 LB: > { %s1709_s9 = sadd.s32 4294967295, %s1636_s30   ;;  %s1160_s10 = sadd.s32 4294967294, %s1636_s30   ;;  %s1636_s30 = sphi %s1694_s30, %s2305_s30   ;;  %s1632_s29 = sphi %s1692_s29, %s2304_s29   ;;  %s1628_s28 = sphi %s1690_s28, %s2303_s28   ;;  %s1624_s27 = sphi %s1688_s27, %s2302_s27  }
   0x4   : > { %s1713_s11 = sadd.s32 1, %s1636_s30   ;;  %s201_s12 = sadd.s32 1, %s1632_s29 }
   0x5   : > { %s198_s13 = ssub.s32 %s1636_s30, %s1713_s11  ;;  %p211_p0 = scmp.ne.s32.totalorder %s1632_s29, %s1628_s28 }
   0x6   : > { %p199_p1 = scmp.eq.s32.totalorder %s198_s13, 0  ;;  %p212_p2 = scmp.eq.s32.totalorder %s1709_s9, 1 }
   0x7   : > { %p217_p3 = scmp.ne.s32.totalorder %s1628_s28, %s1624_s27  ;;  %p218_p4 = scmp.eq.s32.totalorder %s1160_s10, 1 }
   0x8   : > { %s1724_s14 = scalar_select %p199_p1, %s1632_s29, %s201_s12  }
   0x9   : > { %p1726_p5 = por %p212_p2, %p211_p0  ;;  %p1730_p6 = por %p218_p4, %p217_p3 }
   0xa   : > { %p1163_p7 = scmp.ge.s32.totalorder %s1636_s30, 1  ;;  %p266_p8 = scmp.lt.s32.totalorder %s1636_s30, 3 }
   0xc   : > { %p267_p9 = pnand %p1163_p7, %p266_p8 }
   0xd   : > { %s300_s21 = smul.u32 (!%p267_p9), 19, %s1709_s9  ;;  %s1640_s19 = smov (!%p267_p9), [#allocation2]  }
   0xe   : > { %270 = sbr.rel (%p267_p9) target bundleno = 705 (0x2c1), region = 52  ;;  %s1580_s20 = sshll.u32 (!%p267_p9), %s1640_s19, 4  ;;  %s1581_s20 = int_to_ptr.vmem [resolvable:$false] %s1580_s20 }
   0xf   : > { %p301_p10 = scmp.lt.s32.totalorder (!%p267_p9), %s300_s21, 37  ;;  %s1192_s25 = smul.u32 (!%p267_p9), 2432, %s1709_s9 }
  0x11   : > { %s2243_s17 = scalar_lea.hbm (!%p267_p9), %s2299_s8, %s1192_s25 }
  0x13   : > { %v386_v0 = vld [vmem:[%s2292_s1 + $0x10] sm:$0x1]  ;;  %vm452_vm0 = vcmask 1040384   ;;  %v1638_v1 = vmov 0.0   ;;  %v385_v2 = vld [vmem:[%s2292_s1 + $0x8] sm:$0xff]  ;;  %vm1639_vm1 = vmmov 0  }
  0x14   : > { %1285 = vmatprep.subr.mxu0 %v1638_v1  ;;  %1526 = vmatprep.subr.mxu1 %v1638_v1  ;;  %v384_v3 = vld [vmem:[%s2292_s1] sm:$0xff]  ;;  %s2307_s21 = smov (!%p301_p10, %s300_s21), 37  ;;  %vm394_vm2 = vcmask 138240   ;;  %vm326_vm3 = vcmask 80896   ;;  %v695_v13 = vld [vmem:[%s2295_s4 + $0x78] sm:$0xff]  ;;  %v694_v19 = vld [vmem:[%s2295_s4 + $0x70] sm:$0xff] }
  0x15   : > { %1286 = vmatpush3.msk.msra.mxu0 %vm452_vm0, %v386_v0  ;;  %1291 = vmatprep.mubr.msk.f32.mxu0 %vm1639_vm1, %v1638_v1  ;;  %s1164_s24 = sshll.u32 %s2307_s21, 3  ;;  %v693_v25 = vld [vmem:[%s2295_s4 + $0x68] sm:$0xff]  ;;  %v692_v31 = vld [vmem:[%s2295_s4 + $0x60] sm:$0xff]  ;;  %v691_v35 = vld [vmem:[%s2295_s4 + $0x58] sm:$0xff]  ;;  %s297_s21 = sand.u32 1, %s1628_s28  }
  0x16   : > { %1287 = vmatprep.subr.mxu0 %v1638_v1  ;;  %1529 = vmatpush3.msk.msra.mxu1 %vm452_vm0, %v386_v0  ;;  %s1759_s10 = scalar_lea.vmem %s2291_s0, %s1164_s24  ;;  %v690_v39 = vld [vmem:[%s2295_s4 + $0x50] sm:$0xff]  ;;  %v689_v43 = vld [vmem:[%s2295_s4 + $0x48] sm:$0xff]  ;;  %v688_v47 = vld [vmem:[%s2295_s4 + $0x40] sm:$0xff]  ;;  %s1532_s22 = smul.u32 152, %s297_s21 }
  0x17   : > { %1288 = vmatpush3.msra.mxu0 %v385_v2  ;;  %1527 = vmatprep.subr.mxu1 %v1638_v1  ;;  %v307_v4 = vld [vmem:[%s1759_s10] sm:$0xff]  ;;  %v309_v5 = vld [vmem:[%s1759_s10 + $0x10] sm:$0xff]  ;;  %v308_v8 = vld [vmem:[%s1759_s10 + $0x8] sm:$0xff]  ;;  %s2251_s9 = scalar_lea.sflag [#allocation3], %s297_s21 }
  0x18   : > { %1289 = vmatprep.subr.mxu0 %v1638_v1  ;;  %1530 = vmatpush3.msra.mxu1 %v385_v2  ;;  %v327_v6 = vsel %vm326_vm3, %v307_v4, -inf  ;;  %v333_v7 = vsel %vm326_vm3, %v309_v5, -inf  ;;  %v310_v9 = vld [vmem:[%s1759_s10 + $0x18] sm:$0xff]  ;;  %v317_v10 = vld [vmem:[%s1759_s10 + $0x50] sm:$0xff]  ;;  %v330_v11 = vsel %vm326_vm3, %v308_v8, -inf  ;;  %v311_v15 = vld [vmem:[%s1759_s10 + $0x20] sm:$0xff] }
  0x19   : > { %1290 = vmatpush3.msra.mxu0 %v384_v3  ;;  %1528 = vmatprep.subr.mxu1 %v1638_v1  ;;  %v336_v12 = vsel %vm326_vm3, %v310_v9, -inf  ;;  %v318_v14 = vld [vmem:[%s1759_s10 + $0x58] sm:$0xff]  ;;  %v312_v16 = vld [vmem:[%s1759_s10 + $0x28] sm:$0xff]  ;;  %v339_v17 = vsel %vm326_vm3, %v311_v15, -inf  ;;  %v319_v20 = vld [vmem:[%s1759_s10 + $0x60] sm:$0xff]  ;;  %v357_v33 = vsel %vm326_vm3, %v317_v10, -inf }
  0x1a   : > { %1531 = vmatpush3.msra.mxu1 %v384_v3  ;;  %1321 = vmatprep.mubr.msk.f32.mxu1 %vm1639_vm1, %v1638_v1  ;;  %v342_v18 = vsel %vm326_vm3, %v312_v16, -inf  ;;  %v313_v21 = vld [vmem:[%s1759_s10 + $0x30] sm:$0xff]  ;;  %v314_v22 = vld [vmem:[%s1759_s10 + $0x38] sm:$0xff]  ;;  %v320_v26 = vld [vmem:[%s1759_s10 + $0x68] sm:$0xff]  ;;  %v360_v34 = vsel %vm326_vm3, %v318_v14, -inf  ;;  %v363_v37 = vsel %vm326_vm3, %v319_v20, -inf }
  0x1b   : > { %1348 = vmatprep.subr.mxu1 %v1638_v1  ;;  %1437 = vmatprep.subr.mxu0 %v1638_v1  ;;  %v345_v23 = vsel %vm326_vm3, %v313_v21, -inf  ;;  %v348_v24 = vsel %vm326_vm3, %v314_v22, -inf  ;;  %v315_v27 = vld [vmem:[%s1759_s10 + $0x40] sm:$0xff]  ;;  %v1817_v28 = vld [vmem:[%s1759_s10 + $0x48] sm:$0xff]  ;;  %v321_v32 = vld [vmem:[%s1759_s10 + $0x70] sm:$0xff]  ;;  %v366_v38 = vsel %vm326_vm3, %v320_v26, -inf }
  0x1c   : > { %1292 = vmatmul.mubr.msk.f32.vlgmr.msra.gmra.mxu0 %vm394_vm2, %v307_v4  ;;  %328 = vmax.xlane.f32.xlu0 %v327_v6  ;;  %v351_v29 = vsel %vm326_vm3, %v315_v27, -inf  ;;  %v354_v30 = vsel %vm326_vm3, %v1817_v28, -inf  ;;  %v322_v36 = vld [vmem:[%s1759_s10 + $0x78] sm:$0xff]  ;;  %v323_v40 = vld [vmem:[%s1759_s10 + $0x80] sm:$0xff]  ;;  %v369_v41 = vsel %vm326_vm3, %v321_v32, -inf  ;;  %v324_v44 = vld [vmem:[%s1759_s10 + $0x88] sm:$0xff] }
  0x1d   : > { %1294 = vmatprep.mubr.msk.f32.mxu0 %vm1639_vm1, %v1638_v1  ;;  %334 = vmax.xlane.f32.xlu1 %v333_v7  ;;  %v372_v42 = vsel %vm326_vm3, %v322_v36, -inf  ;;  %v375_v45 = vsel %vm326_vm3, %v323_v40, -inf  ;;  %v378_v46 = vsel %vm326_vm3, %v324_v44, -inf  ;;  %v325_v48 = vld [vmem:[%s1759_s10 + $0x90] sm:$0xff]  ;;  %v687_v49 = vld [vmem:[%s2295_s4 + $0x38] sm:$0xff]  ;;  %v685_v52 = vld [vmem:[%s2295_s4 + $0x28] sm:$0xff] }
  0x1e   : > { %1322 = vmatmul.mubr.msk.f32.vlgmr.msra.gmra.mxu1 %vm394_vm2, %v317_v10  ;;  %v381_v50 = vsel %vm326_vm3, %v325_v48, -inf  ;;  %v686_v51 = vld [vmem:[%s2295_s4 + $0x30] sm:$0xff]  ;;  %v684_v53 = vld [vmem:[%s2295_s4 + $0x20] sm:$0xff]  ;;  %v683_v54 = vld [vmem:[%s2295_s4 + $0x18] sm:$0xff]  ;;  %s2201_s24 = scalar_lea.vmem [#allocation2], %s1532_s22  ;;  %s1582_s22 = scalar_lea.vmem %s1581_s20, 4864 }
  0x1f   : > { %1324 = vmatprep.mubr.msk.f32.mxu1 %vm1639_vm1, %v1638_v1  ;;  %1349 = vmatpush3.msra.mxu1 %v695_v13  ;;  %v682_v55 = vld [vmem:[%s2295_s4 + $0x10] sm:$0xff]  ;;  %v681_v56 = vld [vmem:[%s2295_s4 + $0x8] sm:$0xff]  ;;  %v680_v57 = vld [vmem:[%s2295_s4] sm:$0xff]  ;;  %s1098_s26 = sshll.u32 %s2201_s24, 4  ;;  %s2245_s26 = int_to_ptr.vmem [resolvable:$true] %s1098_s26 }
  0x20   : > { %1295 = vmatmul.mubr.msk.f32.gmra.mxu0 %vm394_vm2, %v308_v8  ;;  %331 = vmax.xlane.f32.xlu0 %v330_v11  ;;  %v897_v58 = vld [vmem:[%s2297_s6 + $0x78] sm:$0xff]  ;;  %v896_v59 = vld [vmem:[%s2297_s6 + $0x70] sm:$0xff]  ;;  %v895_v60 = vld [vmem:[%s2297_s6 + $0x68] sm:$0xff]  ;;  %s1576_s18 = scalar_lea.vmem %s2245_s26, 2432  ;;  %p1583_p0 = scmp.lt.s32.totalorder %s2245_s26, %s1581_s20 }
  0x21   : > { %1297 = vmatprep.mubr.msk.f32.mxu0 %vm1639_vm1, %v1638_v1  ;;  %337 = vmax.xlane.f32.xlu1 %v336_v12  ;;  %v894_v61 = vld [vmem:[%s2297_s6 + $0x60] sm:$0xff]  ;;  %v893_v62 = vld [vmem:[%s2297_s6 + $0x58] sm:$0xff]  ;;  %v892_v63 = vld [vmem:[%s2297_s6 + $0x50] sm:$0xff]  ;;  %p1577_p11 = scmp.ne.s32.totalorder %s2245_s26, %s1576_s18  ;;  %p1584_p1 = scmp.lt.s32.totalorder %s1582_s22, %s1576_s18 }
  0x22   : > { %1325 = vmatmul.mubr.msk.f32.gmra.mxu1 %vm394_vm2, %v318_v14  ;;  %1350 = vmatprep.subr.mxu1 %v1638_v1  ;;  %v891_v0 = vld [vmem:[%s2297_s6 + $0x48] sm:$0xff]  ;;  %v890_v2 = vld [vmem:[%s2297_s6 + $0x40] sm:$0xff]  ;;  %v889_v3 = vld [vmem:[%s2297_s6 + $0x38] sm:$0xff] }
  0x23   : > { %1327 = vmatprep.mubr.msk.f32.mxu1 %vm1639_vm1, %v1638_v1  ;;  %1351 = vmatpush3.msra.mxu1 %v694_v19  ;;  %v888_v4 = vld [vmem:[%s2297_s6 + $0x30] sm:$0xff]  ;;  %v886_v6 = vld [vmem:[%s2297_s6 + $0x20] sm:$0xff]  ;;  %v885_v7 = vld [vmem:[%s2297_s6 + $0x18] sm:$0xff]  ;;  %p1578_p12 = pnand %p1577_p11, %p1726_p5  ;;  %p1585_p2 = por %p1584_p1, %p1583_p0 }
  0x24   : > { %1298 = vmatmul.mubr.msk.f32.gmra.mxu0 %vm394_vm2, %v309_v5  ;;  %340 = vmax.xlane.f32.xlu0 %v339_v17  ;;  %v887_v5 = vld [vmem:[%s2297_s6 + $0x28] sm:$0xff]  ;;  %v884_v8 = vld [vmem:[%s2297_s6 + $0x10] sm:$0xff]  ;;  %v1984_v12 = vld [vmem:[%s2293_s2] ss:$0 sm:$0xff] }
  0x25   : > { %1300 = vmatprep.mubr.msk.f32.mxu0 %vm1639_vm1, %v1638_v1  ;;  %343 = vmax.xlane.f32.xlu1 %v342_v18  ;;  %v1989_v13 = vld [vmem:[%s2294_s3] ss:$0 sm:$0xff]  ;;  %p1579_p13 = pneg %p1578_p12 }
  0x26   : > { %1328 = vmatmul.mubr.msk.f32.gmra.mxu1 %vm394_vm2, %v319_v20  ;;  %1352 = vmatprep.subr.mxu1 %v1638_v1 }
  0x27   : > { %1330 = vmatprep.mubr.msk.f32.mxu1 %vm1639_vm1, %v1638_v1  ;;  %1353 = vmatpush3.msra.mxu1 %v693_v25  ;;  %p1586_p3 = pnand %p1585_p2, %p1579_p13 }
  0x28   : > { %1301 = vmatmul.mubr.msk.f32.gmra.mxu0 %vm394_vm2, %v310_v9  ;;  %346 = vmax.xlane.f32.xlu0 %v345_v23 }
  0x29   : > { %1303 = vmatprep.mubr.msk.f32.mxu0 %vm1639_vm1, %v1638_v1  ;;  %349 = vmax.xlane.f32.xlu1 %v348_v24 }
  0x2a   : > { %1331 = vmatmul.mubr.msk.f32.gmra.mxu1 %vm394_vm2, %v320_v26  ;;  %1354 = vmatprep.subr.mxu1 %v1638_v1 }
  0x2b   : > { %1333 = vmatprep.mubr.msk.f32.mxu1 %vm1639_vm1, %v1638_v1  ;;  %1355 = vmatpush3.msra.mxu1 %v692_v31 }
  0x2c   : > { %1304 = vmatmul.mubr.msk.f32.gmra.mxu0 %vm394_vm2, %v311_v15  ;;  %352 = vmax.xlane.f32.xlu0 %v351_v29 }
  0x2d   : > { %1306 = vmatprep.mubr.msk.f32.mxu0 %vm1639_vm1, %v1638_v1  ;;  %355 = vmax.xlane.f32.xlu1 %v354_v30 }
  0x2e   : > { %1334 = vmatmul.mubr.msk.f32.gmra.mxu1 %vm394_vm2, %v321_v32  ;;  %1356 = vmatprep.subr.mxu1 %v1638_v1 }
  0x2f   : > { %1336 = vmatprep.mubr.msk.f32.mxu1 %vm1639_vm1, %v1638_v1  ;;  %1357 = vmatpush3.msra.mxu1 %v691_v35 }
  0x30   : > { %1307 = vmatmul.mubr.msk.f32.gmra.mxu0 %vm394_vm2, %v312_v16  ;;  %358 = vmax.xlane.f32.xlu0 %v357_v33 }
  0x31   : > { %1309 = vmatprep.mubr.msk.f32.mxu0 %vm1639_vm1, %v1638_v1  ;;  %361 = vmax.xlane.f32.xlu1 %v360_v34 }
  0x32   : > { %1337 = vmatmul.mubr.msk.f32.gmra.mxu1 %vm394_vm2, %v322_v36  ;;  %1358 = vmatprep.subr.mxu1 %v1638_v1 }
  0x33   : > { %1339 = vmatprep.mubr.msk.f32.mxu1 %vm1639_vm1, %v1638_v1  ;;  %1359 = vmatpush3.msra.mxu1 %v690_v39 }
  0x34   : > { %1310 = vmatmul.mubr.msk.f32.gmra.mxu0 %vm394_vm2, %v313_v21  ;;  %364 = vmax.xlane.f32.xlu0 %v363_v37 }
  0x35   : > { %1312 = vmatprep.mubr.msk.f32.mxu0 %vm1639_vm1, %v1638_v1  ;;  %367 = vmax.xlane.f32.xlu1 %v366_v38 }
  0x36   : > { %1340 = vmatmul.mubr.msk.f32.gmra.mxu1 %vm394_vm2, %v323_v40  ;;  %1360 = vmatprep.subr.mxu1 %v1638_v1 }
  0x37   : > { %1342 = vmatprep.mubr.msk.f32.mxu1 %vm1639_vm1, %v1638_v1  ;;  %1361 = vmatpush3.msra.mxu1 %v689_v43 }
  0x38   : > { %1313 = vmatmul.mubr.msk.f32.gmra.mxu0 %vm394_vm2, %v314_v22  ;;  %370 = vmax.xlane.f32.xlu0 %v369_v41 }
  0x39   : > { %1315 = vmatprep.mubr.msk.f32.mxu0 %vm1639_vm1, %v1638_v1  ;;  %373 = vmax.xlane.f32.xlu1 %v372_v42 }
  0x3a   : > { %1343 = vmatmul.mubr.msk.f32.gmra.mxu1 %vm394_vm2, %v324_v44  ;;  %1362 = vmatprep.subr.mxu1 %v1638_v1 }
  0x3b   : > { %1345 = vmatprep.mubr.msk.f32.mxu1 %vm1639_vm1, %v1638_v1  ;;  %1363 = vmatpush3.msra.mxu1 %v688_v47 }
  0x3c   : > { %1316 = vmatmul.mubr.msk.f32.gmra.mxu0 %vm394_vm2, %v315_v27  ;;  %376 = vmax.xlane.f32.xlu0 %v375_v45 }
  0x3d   : > { %1318 = vmatprep.mubr.msk.f32.mxu0 %vm1639_vm1, %v1638_v1  ;;  %379 = vmax.xlane.f32.xlu1 %v378_v46 }
  0x3e   : > { %1346 = vmatmul.mubr.msk.f32.gmra.mxu1 %vm394_vm2, %v325_v48  ;;  %1364 = vmatprep.subr.mxu1 %v1638_v1 }
  0x3f   : > { %1365 = vmatpush3.msra.mxu1 %v687_v49  ;;  %1380 = vmatprep.mubr.msk.f32.mxu1 %vm1639_vm1, %v1638_v1 }
  0x40   : > { %1319 = vmatmul.mubr.msk.f32.gmra.mxu0 %vm394_vm2, %v1817_v28  ;;  %382 = vmax.xlane.f32.xlu0 %v381_v50 }
  0x41   : > { %1366 = vmatprep.subr.mxu1 %v1638_v1  ;;  %1469 = vmatprep.mubr.msk.f32.mxu0 %vm1639_vm1, %v1638_v1 }
  0x42   : > { %1367 = vmatpush3.msra.mxu1 %v686_v51  ;;  %1438 = vmatpush3.msra.mxu0 %v897_v58 }
  0x43   : > { %1368 = vmatprep.subr.mxu1 %v1638_v1  ;;  %1439 = vmatprep.subr.mxu0 %v1638_v1 }
  0x44   : > { %1369 = vmatpush3.msra.mxu1 %v685_v52  ;;  %1440 = vmatpush3.msra.mxu0 %v896_v59 }
  0x45   : > { %1370 = vmatprep.subr.mxu1 %v1638_v1  ;;  %1441 = vmatprep.subr.mxu0 %v1638_v1 }
  0x46   : > { %1371 = vmatpush3.msra.mxu1 %v684_v53  ;;  %1442 = vmatpush3.msra.mxu0 %v895_v60 }
  0x47   : > { %1372 = vmatprep.subr.mxu1 %v1638_v1  ;;  %1443 = vmatprep.subr.mxu0 %v1638_v1 }
  0x48   : > { %1373 = vmatpush3.msra.mxu1 %v683_v54  ;;  %1444 = vmatpush3.msra.mxu0 %v894_v61 }
  0x49   : > { %1374 = vmatprep.subr.mxu1 %v1638_v1  ;;  %1445 = vmatprep.subr.mxu0 %v1638_v1 }
  0x4a   : > { %1375 = vmatpush3.msra.mxu1 %v682_v55  ;;  %1446 = vmatpush3.msra.mxu0 %v893_v62 }
  0x4b   : > { %1376 = vmatprep.subr.mxu1 %v1638_v1  ;;  %1447 = vmatprep.subr.mxu0 %v1638_v1 }
  0x4c   : > { %1377 = vmatpush3.msra.mxu1 %v681_v56  ;;  %1448 = vmatpush3.msra.mxu0 %v892_v63 }
  0x4d   : > { %1378 = vmatprep.subr.mxu1 %v1638_v1  ;;  %1449 = vmatprep.subr.mxu0 %v1638_v1 }
  0x4e   : > { %1379 = vmatpush3.msra.mxu1 %v680_v57  ;;  %1450 = vmatpush3.msra.mxu0 %v891_v0 }
  0x4f   : > { %1451 = vmatprep.subr.mxu0 %v1638_v1 }
  0x50   : > { %1452 = vmatpush3.msra.mxu0 %v890_v2 }
  0x51   : > { %1453 = vmatprep.subr.mxu0 %v1638_v1 }
  0x52   : > { %1454 = vmatpush3.msra.mxu0 %v889_v3 }
  0x53   : > { %1455 = vmatprep.subr.mxu0 %v1638_v1 }
  0x54   : > { %1456 = vmatpush3.msra.mxu0 %v888_v4 }
  0x55   : > { %1457 = vmatprep.subr.mxu0 %v1638_v1 }
  0x56   : > { %1458 = vmatpush3.msra.mxu0 %v887_v5 }
  0x57   : > { %1459 = vmatprep.subr.mxu0 %v1638_v1 }
  0x58   : > { %1460 = vmatpush3.msra.mxu0 %v886_v6 }
  0x59   : > { %1461 = vmatprep.subr.mxu0 %v1638_v1 }
  0x5a   : > { %1462 = vmatpush3.msra.mxu0 %v885_v7 }
  0x5b   : > { %1463 = vmatprep.subr.mxu0 %v1638_v1 }
  0x5c   : > { %1464 = vmatpush3.msra.mxu0 %v884_v8 }
  0x5d   : > { %1465 = vmatprep.subr.mxu0 %v1638_v1 }
  0xa5   : > { %v329_v9 = vpop.xlane.xlu0 %328 }
  0xa6   : > { %v335_v10 = vpop.xlane.xlu1 %334  ;;  %v623_v15 = vmul.f32 %v1984_v12, %v329_v9 }
  0xa7   : > { %v625_v32 = vmul.f32 %v1984_v12, %v335_v10 }
  0xa9   : > { %v332_v11 = vpop.xlane.xlu0 %331 }
  0xaa   : > { %v338_v14 = vpop.xlane.xlu1 %337  ;;  %v624_v22 = vmul.f32 %v1984_v12, %v332_v11 }
  0xab   : > { %v626_v42 = vmul.f32 %v1984_v12, %v338_v14 }
  0xad   : > { %v341_v16 = vpop.xlane.xlu0 %340 }
  0xae   : > { %v344_v20 = vpop.xlane.xlu1 %343  ;;  %v627_v52 = vmul.f32 %v1984_v12, %v341_v16 }
  0xaf   : > { %v628_v62 = vmul.f32 %v1984_v12, %v344_v20 }
  0xb1   : > { %v347_v23 = vpop.xlane.xlu0 %346 }
  0xb2   : > { %v1997_v30 = vpop.xlane.xlu1 %349  ;;  %v629_v9 = vmul.f32 %v1984_v12, %v347_v23 }
  0xb5   : > { %v2000_v33 = vpop.xlane.xlu0 %352 }
  0xb6   : > { %v2007_v40 = vpop.xlane.xlu1 %355 }
  0xb9   : > { %v2010_v43 = vpop.xlane.xlu0 %358 }
  0xba   : > { %v2017_v50 = vpop.xlane.xlu1 %361 }
  0xbd   : > { %v2020_v53 = vpop.xlane.xlu0 %364 }
  0xbe   : > { %v2027_v60 = vpop.xlane.xlu1 %367 }
  0xc1   : > { %v2032_v0 = vpop.xlane.xlu0 %370 }
  0xc2   : > { %v2037_v7 = vpop.xlane.xlu1 %373 }
  0xc5   : > { %v377_v11 = vpop.xlane.xlu0 %376 }
  0xc6   : > { %v380_v23 = vpop.xlane.xlu1 %379 }
  0xdc   : > { %v522_v17 = vpop.f32.mrf.mxu0 }
  0xdd   : > { %v523_v18 = vadd.f32 %v1989_v13, %v522_v17 }
  0xde   : > { %v1293_v19 = vpop.f32.mrf.mxu0  ;;  %v1994_v24 = vpop.f32.mrf.mxu1 }
  0xdf   : > { %v642_v21 = vsub.f32 %v523_v18, %v623_v15  ;;  %v2046_v19 = vmul.f32 %v1984_v12, %v377_v11  ;;  %v635_v11 = vmul.f32 %v1984_v12, %v2020_v53 }
  0xe0   : > { %v527_v25 = vpop.f32.mrf.mxu0  ;;  %v1323_v28 = vpop.f32.mrf.mxu1 }
  0xe1   : > { %v661_v26 = vmax.f32 %v642_v21, 0.0  ;;  %v528_v27 = vadd.f32 %v1989_v13, %v527_v25  ;;  %v630_v21 = vmul.f32 %v1984_v12, %v1997_v30 }
  0xe2   : > { %v1296_v29 = vpop.f32.mrf.mxu0  ;;  %v2002_v34 = vpop.f32.mrf.mxu1 }
  0xe3   : > { %v643_v31 = vsub.f32 %v528_v27, %v624_v22  ;;  %1381 = vmatmul.mubr.f32.vlgmr.msra.gmra.mxu1 %v661_v26 }
  0xe4   : > { %v532_v35 = vpop.f32.mrf.mxu0  ;;  %1383 = vmatprep.mubr.msk.f32.mxu1 %vm1639_vm1, %v1638_v1  ;;  %v1326_v38 = vpop.f32.mrf.mxu1 }
  0xe5   : > { %v662_v36 = vmax.f32 %v643_v31, 0.0  ;;  %v533_v37 = vadd.f32 %v1989_v13, %v532_v35  ;;  %v2059_v35 = vmul.f32 %v1984_v12, %v380_v23  ;;  %v383_v38 = vpop.xlane.xlu0 %382 }
  0xe6   : > { %v1299_v39 = vpop.f32.mrf.mxu0  ;;  %v2012_v44 = vpop.f32.mrf.mxu1 }
  0xe7   : > { %v644_v41 = vsub.f32 %v533_v37, %v625_v32  ;;  %1384 = vmatmul.mubr.f32.gmra.mxu1 %v662_v36  ;;  %v631_v36 = vmul.f32 %v1984_v12, %v2000_v33  ;;  %v632_v33 = vmul.f32 %v1984_v12, %v2007_v40 }
  0xe8   : > { %v537_v45 = vpop.f32.mrf.mxu0  ;;  %1386 = vmatprep.mubr.msk.f32.mxu1 %vm1639_vm1, %v1638_v1  ;;  %v1329_v48 = vpop.f32.mrf.mxu1 }
  0xe9   : > { %v663_v46 = vmax.f32 %v644_v41, 0.0  ;;  %v538_v47 = vadd.f32 %v1989_v13, %v537_v45 }
  0xea   : > { %v1302_v49 = vpop.f32.mrf.mxu0  ;;  %v2022_v54 = vpop.f32.mrf.mxu1 }
  0xeb   : > { %v645_v51 = vsub.f32 %v538_v47, %v626_v42  ;;  %1387 = vmatmul.mubr.f32.gmra.mxu1 %v663_v46  ;;  %v2069_v49 = vmul.f32 %v1984_v12, %v383_v38 }
  0xec   : > { %v542_v55 = vpop.f32.mrf.mxu0  ;;  %1389 = vmatprep.mubr.msk.f32.mxu1 %vm1639_vm1, %v1638_v1  ;;  %v1332_v58 = vpop.f32.mrf.mxu1 }
  0xed   : > { %v664_v56 = vmax.f32 %v645_v51, 0.0  ;;  %v543_v57 = vadd.f32 %v1989_v13, %v542_v55  ;;  %v633_v55 = vmul.f32 %v1984_v12, %v2010_v43  ;;  %v578_v43 = vadd.f32 %v1989_v13, %v2002_v34 }
  0xee   : > { %v1305_v59 = vpop.f32.mrf.mxu0  ;;  %v2030_v63 = vpop.f32.mrf.mxu1 }
  0xef   : > { %v646_v61 = vsub.f32 %v543_v57, %v627_v52  ;;  %1390 = vmatmul.mubr.f32.gmra.mxu1 %v664_v56  ;;  %v573_v52 = vadd.f32 %v1989_v13, %v1994_v24  ;;  %v593_v53 = vadd.f32 %v1989_v13, %v2030_v63 }
  0xf0   : > { %v547_v2 = vpop.f32.mrf.mxu0  ;;  %1392 = vmatprep.mubr.msk.f32.mxu1 %vm1639_vm1, %v1638_v1  ;;  %v1335_v5 = vpop.f32.mrf.mxu1 }
  0xf1   : > { %v665_v3 = vmax.f32 %v646_v61, 0.0  ;;  %v548_v4 = vadd.f32 %v1989_v13, %v547_v2  ;;  %v652_v24 = vsub.f32 %v573_v52, %v633_v55 }
  0xf2   : > { %v1308_v6 = vpop.f32.mrf.mxu0  ;;  %v2040_v10 = vpop.f32.mrf.mxu1 }
  0xf3   : > { %v647_v8 = vsub.f32 %v548_v4, %v628_v62  ;;  %1393 = vmatmul.mubr.f32.gmra.mxu1 %v665_v3  ;;  %v634_v4 = vmul.f32 %v1984_v12, %v2017_v50  ;;  %v671_v6 = vmax.f32 %v652_v24, 0.0  ;;  %v588_v50 = vadd.f32 %v1989_v13, %v2022_v54 }
  0xf4   : > { %v552_v14 = vpop.f32.mrf.mxu0  ;;  %1395 = vmatprep.mubr.msk.f32.mxu1 %vm1639_vm1, %v1638_v1  ;;  %v1338_v17 = vpop.f32.mrf.mxu1 }
  0xf5   : > { %v666_v15 = vmax.f32 %v647_v8, 0.0  ;;  %v553_v16 = vadd.f32 %v1989_v13, %v552_v14  ;;  %v653_v8 = vsub.f32 %v578_v43, %v634_v4  ;;  %v637_v17 = vmul.f32 %v1984_v12, %v2032_v0 }
  0xf6   : > { %v1311_v18 = vpop.f32.mrf.mxu0  ;;  %v602_v22 = vpop.f32.mrf.mxu1 }
  0xf7   : > { %v648_v20 = vsub.f32 %v553_v16, %v629_v9  ;;  %1396 = vmatmul.mubr.f32.gmra.mxu1 %v666_v15  ;;  %v2053_v26 = vadd.f32 %v1989_v13, %v602_v22  ;;  %v583_v9 = vadd.f32 %v1989_v13, %v2012_v44  ;;  %v672_v34 = vmax.f32 %v653_v8, 0.0  ;;  %v2135_v22 = vld [vmem:[%s2296_s5] ss:$0 sm:$0xff] }
  0xf8   : > { %v557_v25 = vpop.f32.mrf.mxu0  ;;  %1398 = vmatprep.mubr.msk.f32.mxu1 %vm1639_vm1, %v1638_v1  ;;  %v1341_v29 = vpop.f32.mrf.mxu1  ;;  %v636_v15 = vmul.f32 %v1984_v12, %v2027_v60  ;;  %v656_v54 = vsub.f32 %v593_v53, %v637_v17  ;;  %v598_v60 = vadd.f32 %v1989_v13, %v2040_v10  ;;  %v882_v10 = vld [vmem:[%s2297_s6] sm:$0xff] }
  0xf9   : > { %v667_v27 = vmax.f32 %v648_v20, 0.0  ;;  %v558_v28 = vadd.f32 %v1989_v13, %v557_v25  ;;  %v658_v32 = vsub.f32 %v2053_v26, %v2046_v19  ;;  %v654_v14 = vsub.f32 %v583_v9, %v635_v11 }
  0xfa   : > { %v1314_v31 = vpop.f32.mrf.mxu0  ;;  %v607_v37 = vpop.f32.mrf.mxu1  ;;  %v655_v44 = vsub.f32 %v588_v50, %v636_v15  ;;  %v638_v20 = vmul.f32 %v1984_v12, %v2037_v7  ;;  %v883_v7 = vld [vmem:[%s2297_s6 + $0x8] sm:$0xff] }
  0xfb   : > { %v649_v30 = vsub.f32 %v558_v28, %v630_v21  ;;  %1399 = vmatmul.mubr.f32.gmra.mxu1 %v667_v27  ;;  %v608_v41 = vadd.f32 %v1989_v13, %v607_v37  ;;  %v673_v16 = vmax.f32 %v654_v14, 0.0  ;;  %v675_v21 = vmax.f32 %v656_v54, 0.0  ;;  %1466 = vmatpush3.msra.mxu0 %v883_v7 }
  0xfc   : > { %v562_v39 = vpop.f32.mrf.mxu0  ;;  %1401 = vmatprep.mubr.msk.f32.mxu1 %vm1639_vm1, %v1638_v1  ;;  %v1344_v46 = vpop.f32.mrf.mxu1  ;;  %v674_v18 = vmax.f32 %v655_v44, 0.0  ;;  %v657_v63 = vsub.f32 %v598_v60, %v638_v20  ;;  %1467 = vmatprep.subr.mxu0 %v1638_v1 }
  0xfd   : > { %v668_v42 = vmax.f32 %v649_v30, 0.0  ;;  %v563_v45 = vadd.f32 %v1989_v13, %v562_v39  ;;  %v659_v48 = vsub.f32 %v608_v41, %v2059_v35  ;;  %1468 = vmatpush3.msra.mxu0 %v882_v10 }
  0xfe   : > { %v1317_v47 = vpop.f32.mrf.mxu0  ;;  %v612_v56 = vpop.f32.mrf.mxu1  ;;  %v676_v0 = vmax.f32 %v657_v63, 0.0 }
  0xff   : > { %v650_v51 = vsub.f32 %v563_v45, %v631_v36  ;;  %1402 = vmatmul.mubr.f32.gmra.mxu1 %v668_v42  ;;  %v613_v58 = vadd.f32 %v1989_v13, %v612_v56  ;;  %v678_v12 = vmax.f32 %v659_v48, 0.0 }
 0x100   : > { %v567_v57 = vpop.f32.mrf.mxu0  ;;  %1404 = vmatprep.mubr.msk.f32.mxu1 %vm1639_vm1, %v1638_v1  ;;  %v1347_v62 = vpop.f32.mrf.mxu1 }
 0x101   : > { %v669_v59 = vmax.f32 %v650_v51, 0.0  ;;  %v568_v61 = vadd.f32 %v1989_v13, %v567_v57  ;;  %v660_v40 = vsub.f32 %v613_v58, %v2069_v49  ;;  %v677_v13 = vmax.f32 %v658_v32, 0.0 }
 0x102   : > { %v1320_v2 = vpop.f32.mrf.mxu0 }
 0x103   : > { %v651_v3 = vsub.f32 %v568_v61, %v632_v33  ;;  %1405 = vmatmul.mubr.f32.gmra.mxu1 %v669_v59  ;;  %v679_v19 = vmax.f32 %v660_v40, 0.0 }
 0x104   : > { %1407 = vmatprep.mubr.msk.f32.mxu1 %vm1639_vm1, %v1638_v1 }
 0x105   : > { %v670_v5 = vmax.f32 %v651_v3, 0.0 }
 0x107   : > { %1408 = vmatmul.mubr.f32.gmra.mxu1 %v670_v5 }
 0x108   : > { %1410 = vmatprep.mubr.msk.f32.mxu1 %vm1639_vm1, %v1638_v1 }
 0x10b   : > { %1411 = vmatmul.mubr.f32.gmra.mxu1 %v671_v6 }
 0x10c   : > { %1413 = vmatprep.mubr.msk.f32.mxu1 %vm1639_vm1, %v1638_v1 }
 0x10f   : > { %1414 = vmatmul.mubr.f32.gmra.mxu1 %v672_v34 }
 0x110   : > { %1416 = vmatprep.mubr.msk.f32.mxu1 %vm1639_vm1, %v1638_v1 }
 0x113   : > { %1417 = vmatmul.mubr.f32.gmra.mxu1 %v673_v16 }
 0x114   : > { %1419 = vmatprep.mubr.msk.f32.mxu1 %vm1639_vm1, %v1638_v1 }
 0x117   : > { %1420 = vmatmul.mubr.f32.gmra.mxu1 %v674_v18 }
 0x118   : > { %1422 = vmatprep.mubr.msk.f32.mxu1 %vm1639_vm1, %v1638_v1 }
 0x11b   : > { %1423 = vmatmul.mubr.f32.gmra.mxu1 %v675_v21 }
 0x11c   : > { %1425 = vmatprep.mubr.msk.f32.mxu1 %vm1639_vm1, %v1638_v1 }
 0x11f   : > { %1426 = vmatmul.mubr.f32.gmra.mxu1 %v676_v0 }
 0x120   : > { %1428 = vmatprep.mubr.msk.f32.mxu1 %vm1639_vm1, %v1638_v1 }
 0x123   : > { %1429 = vmatmul.mubr.f32.gmra.mxu1 %v677_v13 }
 0x124   : > { %1431 = vmatprep.mubr.msk.f32.mxu1 %vm1639_vm1, %v1638_v1 }
 0x127   : > { %1432 = vmatmul.mubr.f32.gmra.mxu1 %v678_v12 }
 0x128   : > { %1434 = vmatprep.mubr.msk.f32.mxu1 %vm1639_vm1, %v1638_v1 }
 0x12b   : > { %1435 = vmatmul.mubr.f32.gmra.mxu1 %v679_v19 }
 0x1a3   : > { %v769_v23 = vpop.f32.mrf.mxu1 }
 0x1a4   : > { %v770_v25 = vadd.f32 %v2135_v22, %v769_v23 }
 0x1a5   : > { %v1382_v26 = vpop.f32.mrf.mxu1 }
 0x1a6   : > { %v863_v27 = vmax.f32 %v770_v25, 0.0 }
 0x1a7   : > { %v774_v28 = vpop.f32.mrf.mxu1 }
 0x1a8   : > { %v775_v29 = vadd.f32 %v2135_v22, %v774_v28  ;;  %1470 = vmatmul.mubr.f32.vlgmr.msra.gmra.mxu0 %v863_v27 }
 0x1a9   : > { %v1385_v31 = vpop.f32.mrf.mxu1  ;;  %1472 = vmatprep.mubr.msk.f32.mxu0 %vm1639_vm1, %v1638_v1 }
 0x1aa   : > { %v864_v32 = vmax.f32 %v775_v29, 0.0 }
 0x1ab   : > { %v779_v35 = vpop.f32.mrf.mxu1 }
 0x1ac   : > { %v780_v30 = vadd.f32 %v2135_v22, %v779_v35  ;;  %1473 = vmatmul.mubr.f32.gmra.mxu0 %v864_v32 }
 0x1ad   : > { %v1388_v36 = vpop.f32.mrf.mxu1  ;;  %1475 = vmatprep.mubr.msk.f32.mxu0 %vm1639_vm1, %v1638_v1 }
 0x1ae   : > { %v865_v37 = vmax.f32 %v780_v30, 0.0 }
 0x1af   : > { %v784_v38 = vpop.f32.mrf.mxu1 }
 0x1b0   : > { %v785_v39 = vadd.f32 %v2135_v22, %v784_v38  ;;  %1476 = vmatmul.mubr.f32.gmra.mxu0 %v865_v37 }
 0x1b1   : > { %v1391_v41 = vpop.f32.mrf.mxu1  ;;  %1478 = vmatprep.mubr.msk.f32.mxu0 %vm1639_vm1, %v1638_v1 }
 0x1b2   : > { %v866_v42 = vmax.f32 %v785_v39, 0.0  ;;  %v2198_v41 = vld [vmem:[%s2298_s7] ss:$0 sm:$0xff] }
 0x1b3   : > { %v789_v45 = vpop.f32.mrf.mxu1 }
 0x1b4   : > { %v790_v46 = vadd.f32 %v2135_v22, %v789_v45  ;;  %1479 = vmatmul.mubr.f32.gmra.mxu0 %v866_v42 }
 0x1b5   : > { %v1394_v47 = vpop.f32.mrf.mxu1  ;;  %1481 = vmatprep.mubr.msk.f32.mxu0 %vm1639_vm1, %v1638_v1 }
 0x1b6   : > { %v867_v48 = vmax.f32 %v790_v46, 0.0 }
 0x1b7   : > { %v794_v49 = vpop.f32.mrf.mxu1 }
 0x1b8   : > { %v795_v51 = vadd.f32 %v2135_v22, %v794_v49  ;;  %1482 = vmatmul.mubr.f32.gmra.mxu0 %v867_v48 }
 0x1b9   : > { %v1397_v33 = vpop.f32.mrf.mxu1  ;;  %1484 = vmatprep.mubr.msk.f32.mxu0 %vm1639_vm1, %v1638_v1 }
 0x1ba   : > { %v868_v52 = vmax.f32 %v795_v51, 0.0 }
 0x1bb   : > { %v799_v55 = vpop.f32.mrf.mxu1 }
 0x1bc   : > { %v800_v56 = vadd.f32 %v2135_v22, %v799_v55  ;;  %1485 = vmatmul.mubr.f32.gmra.mxu0 %v868_v52 }
 0x1bd   : > { %v1400_v57 = vpop.f32.mrf.mxu1  ;;  %1487 = vmatprep.mubr.msk.f32.mxu0 %vm1639_vm1, %v1638_v1 }
 0x1be   : > { %v869_v58 = vmax.f32 %v800_v56, 0.0 }
 0x1bf   : > { %v804_v59 = vpop.f32.mrf.mxu1 }
 0x1c0   : > { %v805_v61 = vadd.f32 %v2135_v22, %v804_v59  ;;  %1488 = vmatmul.mubr.f32.gmra.mxu0 %v869_v58 }
 0x1c1   : > { %v1403_v62 = vpop.f32.mrf.mxu1  ;;  %1490 = vmatprep.mubr.msk.f32.mxu0 %vm1639_vm1, %v1638_v1 }
 0x1c2   : > { %v870_v2 = vmax.f32 %v805_v61, 0.0 }
 0x1c3   : > { %v809_v40 = vpop.f32.mrf.mxu1 }
 0x1c4   : > { %v810_v3 = vadd.f32 %v2135_v22, %v809_v40  ;;  %1491 = vmatmul.mubr.f32.gmra.mxu0 %v870_v2 }
 0x1c5   : > { %v1406_v24 = vpop.f32.mrf.mxu1  ;;  %1493 = vmatprep.mubr.msk.f32.mxu0 %vm1639_vm1, %v1638_v1 }
 0x1c6   : > { %v871_v43 = vmax.f32 %v810_v3, 0.0 }
 0x1c7   : > { %v814_v4 = vpop.f32.mrf.mxu1 }
 0x1c8   : > { %v815_v5 = vadd.f32 %v2135_v22, %v814_v4  ;;  %1494 = vmatmul.mubr.f32.gmra.mxu0 %v871_v43 }
 0x1c9   : > { %v1409_v6 = vpop.f32.mrf.mxu1  ;;  %1496 = vmatprep.mubr.msk.f32.mxu0 %vm1639_vm1, %v1638_v1 }
 0x1ca   : > { %v872_v8 = vmax.f32 %v815_v5, 0.0 }
 0x1cb   : > { %v819_v9 = vpop.f32.mrf.mxu1 }
 0x1cc   : > { %v820_v11 = vadd.f32 %v2135_v22, %v819_v9  ;;  %1497 = vmatmul.mubr.f32.gmra.mxu0 %v872_v8 }
 0x1cd   : > { %v1412_v34 = vpop.f32.mrf.mxu1  ;;  %1499 = vmatprep.mubr.msk.f32.mxu0 %vm1639_vm1, %v1638_v1 }
 0x1ce   : > { %v873_v14 = vmax.f32 %v820_v11, 0.0 }
 0x1cf   : > { %v824_v50 = vpop.f32.mrf.mxu1 }
 0x1d0   : > { %v825_v15 = vadd.f32 %v2135_v22, %v824_v50  ;;  %1500 = vmatmul.mubr.f32.gmra.mxu0 %v873_v14 }
 0x1d1   : > { %v1415_v16 = vpop.f32.mrf.mxu1  ;;  %1502 = vmatprep.mubr.msk.f32.mxu0 %vm1639_vm1, %v1638_v1 }
 0x1d2   : > { %v874_v44 = vmax.f32 %v825_v15, 0.0 }
 0x1d3   : > { %v829_v53 = vpop.f32.mrf.mxu1 }
 0x1d4   : > { %v830_v17 = vadd.f32 %v2135_v22, %v829_v53  ;;  %1503 = vmatmul.mubr.f32.gmra.mxu0 %v874_v44 }
 0x1d5   : > { %v1418_v18 = vpop.f32.mrf.mxu1  ;;  %1505 = vmatprep.mubr.msk.f32.mxu0 %vm1639_vm1, %v1638_v1 }
 0x1d6   : > { %v875_v54 = vmax.f32 %v830_v17, 0.0 }
 0x1d7   : > { %v834_v60 = vpop.f32.mrf.mxu1 }
 0x1d8   : > { %v835_v20 = vadd.f32 %v2135_v22, %v834_v60  ;;  %1506 = vmatmul.mubr.f32.gmra.mxu0 %v875_v54 }
 0x1d9   : > { %v1421_v21 = vpop.f32.mrf.mxu1  ;;  %1508 = vmatprep.mubr.msk.f32.mxu0 %vm1639_vm1, %v1638_v1 }
 0x1da   : > { %v876_v63 = vmax.f32 %v835_v20, 0.0 }
 0x1db   : > { %v839_v0 = vpop.f32.mrf.mxu1 }
 0x1dc   : > { %v840_v13 = vadd.f32 %v2135_v22, %v839_v0  ;;  %1509 = vmatmul.mubr.f32.gmra.mxu0 %v876_v63 }
 0x1dd   : > { %v1424_v12 = vpop.f32.mrf.mxu1  ;;  %1511 = vmatprep.mubr.msk.f32.mxu0 %vm1639_vm1, %v1638_v1 }
 0x1de   : > { %v877_v7 = vmax.f32 %v840_v13, 0.0 }
 0x1df   : > { %v844_v10 = vpop.f32.mrf.mxu1 }
 0x1e0   : > { %v845_v19 = vadd.f32 %v2135_v22, %v844_v10  ;;  %1512 = vmatmul.mubr.f32.gmra.mxu0 %v877_v7 }
 0x1e1   : > { %v1427_v23 = vpop.f32.mrf.mxu1  ;;  %1514 = vmatprep.mubr.msk.f32.mxu0 %vm1639_vm1, %v1638_v1 }
 0x1e2   : > { %v878_v25 = vmax.f32 %v845_v19, 0.0 }
 0x1e3   : > { %v849_v26 = vpop.f32.mrf.mxu1 }
 0x1e4   : > { %v850_v27 = vadd.f32 %v2135_v22, %v849_v26  ;;  %1515 = vmatmul.mubr.f32.gmra.mxu0 %v878_v25 }
 0x1e5   : > { %v1430_v28 = vpop.f32.mrf.mxu1  ;;  %1517 = vmatprep.mubr.msk.f32.mxu0 %vm1639_vm1, %v1638_v1 }
 0x1e6   : > { %v879_v29 = vmax.f32 %v850_v27, 0.0 }
 0x1e7   : > { %v854_v31 = vpop.f32.mrf.mxu1 }
 0x1e8   : > { %v855_v32 = vadd.f32 %v2135_v22, %v854_v31  ;;  %1518 = vmatmul.mubr.f32.gmra.mxu0 %v879_v29 }
 0x1e9   : > { %v1433_v35 = vpop.f32.mrf.mxu1  ;;  %1520 = vmatprep.mubr.msk.f32.mxu0 %vm1639_vm1, %v1638_v1 }
 0x1ea   : > { %v880_v30 = vmax.f32 %v855_v32, 0.0 }
 0x1eb   : > { %v859_v36 = vpop.f32.mrf.mxu1 }
 0x1ec   : > { %v860_v37 = vadd.f32 %v2135_v22, %v859_v36  ;;  %1521 = vmatmul.mubr.f32.gmra.mxu0 %v880_v30 }
 0x1ed   : > { %v1436_v38 = vpop.f32.mrf.mxu1  ;;  %1523 = vmatprep.mubr.msk.f32.mxu0 %vm1639_vm1, %v1638_v1 }
 0x1ee   : > { %v881_v39 = vmax.f32 %v860_v37, 0.0 }
 0x1f0   : > { %1524 = vmatmul.mubr.f32.gmra.mxu0 %v881_v39 }
 0x268   : > { %v971_v42 = vpop.f32.mrf.mxu0 }
 0x269   : > { %v972_v45 = vadd.f32 %v2198_v41, %v971_v42 }
 0x26a   : > { %v1471_v46 = vpop.f32.mrf.mxu0 }
 0x26b   : > { %1065 = vst [vmem:[%s2201_s24] sm:$0xff] %v972_v45 }
 0x26c   : > { %v976_v1 = vpop.f32.mrf.mxu0 }
 0x26d   : > { %v977_v22 = vadd.f32 %v2198_v41, %v976_v1 }
 0x26e   : > { %v1474_v47 = vpop.f32.mrf.mxu0 }
 0x26f   : > { %1066 = vst [vmem:[%s2201_s24 + $0x8] sm:$0xff] %v977_v22 }
 0x270   : > { %v981_v48 = vpop.f32.mrf.mxu0 }
 0x271   : > { %v982_v49 = vadd.f32 %v2198_v41, %v981_v48 }
 0x272   : > { %v1477_v51 = vpop.f32.mrf.mxu0 }
 0x273   : > { %1067 = vst [vmem:[%s2201_s24 + $0x10] sm:$0xff] %v982_v49 }
 0x274   : > { %v986_v33 = vpop.f32.mrf.mxu0 }
 0x275   : > { %v987_v52 = vadd.f32 %v2198_v41, %v986_v33 }
 0x276   : > { %v1480_v55 = vpop.f32.mrf.mxu0 }
 0x277   : > { %1068 = vst [vmem:[%s2201_s24 + $0x18] sm:$0xff] %v987_v52 }
 0x278   : > { %v991_v56 = vpop.f32.mrf.mxu0 }
 0x279   : > { %v992_v57 = vadd.f32 %v2198_v41, %v991_v56 }
 0x27a   : > { %v1483_v58 = vpop.f32.mrf.mxu0 }
 0x27b   : > { %1069 = vst [vmem:[%s2201_s24 + $0x20] sm:$0xff] %v992_v57 }
 0x27c   : > { %v996_v59 = vpop.f32.mrf.mxu0 }
 0x27d   : > { %v997_v61 = vadd.f32 %v2198_v41, %v996_v59 }
 0x27e   : > { %v1486_v62 = vpop.f32.mrf.mxu0 }
 0x27f   : > { %1070 = vst [vmem:[%s2201_s24 + $0x28] sm:$0xff] %v997_v61 }
 0x280   : > { %v1001_v2 = vpop.f32.mrf.mxu0 }
 0x281   : > { %v1002_v40 = vadd.f32 %v2198_v41, %v1001_v2 }
 0x282   : > { %v1489_v3 = vpop.f32.mrf.mxu0 }
 0x283   : > { %1071 = vst [vmem:[%s2201_s24 + $0x30] sm:$0xff] %v1002_v40 }
 0x284   : > { %v1006_v24 = vpop.f32.mrf.mxu0 }
 0x285   : > { %v1007_v43 = vadd.f32 %v2198_v41, %v1006_v24 }
 0x286   : > { %v1492_v4 = vpop.f32.mrf.mxu0 }
 0x287   : > { %1072 = vst [vmem:[%s2201_s24 + $0x38] sm:$0xff] %v1007_v43 }
 0x288   : > { %v1011_v5 = vpop.f32.mrf.mxu0 }
 0x289   : > { %v1012_v6 = vadd.f32 %v2198_v41, %v1011_v5 }
 0x28a   : > { %v1495_v8 = vpop.f32.mrf.mxu0 }
 0x28b   : > { %1073 = vst [vmem:[%s2201_s24 + $0x40] sm:$0xff] %v1012_v6 }
 0x28c   : > { %v1016_v9 = vpop.f32.mrf.mxu0 }
 0x28d   : > { %v1017_v11 = vadd.f32 %v2198_v41, %v1016_v9 }
 0x28e   : > { %v1498_v34 = vpop.f32.mrf.mxu0 }
 0x28f   : > { %1074 = vst [vmem:[%s2201_s24 + $0x48] sm:$0xff] %v1017_v11 }
 0x290   : > { %v1021_v14 = vpop.f32.mrf.mxu0 }
 0x291   : > { %v1022_v50 = vadd.f32 %v2198_v41, %v1021_v14 }
 0x292   : > { %v1501_v15 = vpop.f32.mrf.mxu0 }
 0x293   : > { %1075 = vst [vmem:[%s2201_s24 + $0x50] sm:$0xff] %v1022_v50 }
 0x294   : > { %v1026_v16 = vpop.f32.mrf.mxu0 }
 0x295   : > { %v1027_v44 = vadd.f32 %v2198_v41, %v1026_v16 }
 0x296   : > { %v1504_v53 = vpop.f32.mrf.mxu0 }
 0x297   : > { %1076 = vst [vmem:[%s2201_s24 + $0x58] sm:$0xff] %v1027_v44 }
 0x298   : > { %v1031_v17 = vpop.f32.mrf.mxu0 }
 0x299   : > { %v1032_v18 = vadd.f32 %v2198_v41, %v1031_v17 }
 0x29a   : > { %v1507_v54 = vpop.f32.mrf.mxu0 }
 0x29b   : > { %1077 = vst [vmem:[%s2201_s24 + $0x60] sm:$0xff] %v1032_v18 }
 0x29c   : > { %v1036_v60 = vpop.f32.mrf.mxu0 }
 0x29d   : > { %v1037_v20 = vadd.f32 %v2198_v41, %v1036_v60 }
 0x29e   : > { %v1510_v21 = vpop.f32.mrf.mxu0 }
 0x29f   : > { %1078 = vst [vmem:[%s2201_s24 + $0x68] sm:$0xff] %v1037_v20 }
 0x2a0   : > { %v1041_v63 = vpop.f32.mrf.mxu0 }
 0x2a1   : > { %v1042_v0 = vadd.f32 %v2198_v41, %v1041_v63 }
 0x2a2   : > { %v1513_v13 = vpop.f32.mrf.mxu0 }
 0x2a3   : > { %1079 = vst [vmem:[%s2201_s24 + $0x70] sm:$0xff] %v1042_v0 }
 0x2a4   : > { %v1046_v12 = vpop.f32.mrf.mxu0 }
 0x2a5   : > { %v1047_v7 = vadd.f32 %v2198_v41, %v1046_v12 }
 0x2a6   : > { %v1516_v10 = vpop.f32.mrf.mxu0 }
 0x2a7   : > { %1080 = vst [vmem:[%s2201_s24 + $0x78] sm:$0xff] %v1047_v7 }
 0x2a8   : > { %v1051_v19 = vpop.f32.mrf.mxu0 }
 0x2a9   : > { %v1052_v23 = vadd.f32 %v2198_v41, %v1051_v19 }
 0x2aa   : > { %v1519_v25 = vpop.f32.mrf.mxu0 }
 0x2ab   : > { %1081 = vst [vmem:[%s2201_s24 + $0x80] sm:$0xff] %v1052_v23 }
 0x2ac   : > { %v1056_v26 = vpop.f32.mrf.mxu0 }
 0x2ad   : > { %v1057_v27 = vadd.f32 %v2198_v41, %v1056_v26 }
 0x2ae   : > { %v1522_v28 = vpop.f32.mrf.mxu0 }
 0x2af   : > { %1082 = vst [vmem:[%s2201_s24 + $0x88] sm:$0xff] %v1057_v27 }
 0x2b0   : > { %v1061_v29 = vpop.f32.mrf.mxu0 }
 0x2b1   : > { %v1062_v31 = vadd.f32 %v2198_v41, %v1061_v29 }
 0x2b2   : > { %v1525_v32 = vpop.f32.mrf.mxu0 }
 0x2b3   : > { %1083 = vst [vmem:[%s2201_s24 + $0x90] sm:$0xff] %v1062_v31 }
 0x2b4   : > { %1589 = shalt.err (!%p1586_p3)
}
 0x2b5   : > { %s1590_s21 = scalar_lea.hbm %s2243_s17, 2432  ;;  %s1594_s24 = scalar_lea.hbm %s2299_s8, 4864 }
 0x2b6   : > { %p1591_p4 = scmp.ne.s32.totalorder %s2243_s17, %s1590_s21  ;;  %p1595_p9 = scmp.lt.s32.totalorder %s2243_s17, %s2299_s8 }
 0x2b7   : > { %p1596_p10 = scmp.lt.s32.totalorder %s1594_s24, %s1590_s21 }
 0x2b8   : > { %p1592_p7 = pnand %p1591_p4, %p1726_p5 }
 0x2b9   : > { %p1597_p11 = por %p1596_p10, %p1595_p9 }
 0x2ba   : > { %p1593_p8 = pneg %p1592_p7 }
 0x2bc   : > { %p1598_p12 = pnand %p1597_p11, %p1593_p8 }
 0x2be   : > { %1601 = shalt.err (!%p1598_p12)
}
 0x2bf   : > { %s1641_s13 = smov 128   ;;  %s1642_s18 = smov 8  }
 0x2c0   : > { %1533 = dma.vmem_to_hbm [thread:$0]  (%p1726_p5), %s2245_s26, 2432, %s2243_s17, %s2251_s9, %s1641_s13, %s1641_s13, %s1642_s18  }
 0x2c1 PF: > { %p1539_p13 = scmp.ge.s32.totalorder %s1636_s30, 2  ;;  %s1113_s19 = sand.u32 1, %s1624_s27  }
 0x2c2   : > { %s1114_s20 = scalar_lea.sflag [#allocation3], %s1113_s19 }
 0x2c3   : > { %p1536_p0 = pnand %p1539_p13, %p1730_p6 }
 0x2c5   : > { %p1537_p1 = pneg %p1536_p0 }
 0x2c7   : > { %1619 = dma.done.wait (%p1537_p1), %s1114_s20, 2432  }
 0x2c8   : > { %1621 = vsyncadd (%p1537_p1), %s1114_s20, 4294964864  ;;  %p18_p2 = scmp.ge.s32.totalorder %s1713_s11, 4   ;;  %s2302_s27 = smov %s1628_s28 }
 0x2c9   : > { %s2303_s28 = smov %s1632_s29  ;;  %s2304_s29 = smov %s1724_s14 }
 0x2ca   : > { %s2305_s30 = smov %s1713_s11  ;;  %20 = sbr.rel (!%p18_p2) target bundleno = 3 (0x3), region = 87 }
 0x2cf   :  { %1119 = vsyncpa [#allocation3], 1 }
 0x2d0   :  { %1121 = vsyncpa [#allocation3 + $0x1], 1 }

</bundles_post_ra>
